<compile_context>
chip_gen: v6e
topology: v6e:2x2x1
jax: 0.10.0
libtpu: 0.0.40
codegen_flags: <defaults>
</compile_context>

<pallas_src>
import functools

import jax
import jax.numpy as jnp
from jax import lax
from jax.experimental import pallas as pl
from jax.experimental.pallas import tpu as pltpu

LANE = 128
VMEM_LIMIT_BYTES = 48 * 1024 * 1024  # < v7x's 64 MiB physical, > all default scoped limits


# ---------------------------------------------------------------------------
# Pallas kernels
# ---------------------------------------------------------------------------
def gcn_layer1_kernel(adj_ref, xw1_ref, b1_ref, w2_ref, h1w2_ref):
    """Per row tile: H1W2 = ReLU(Â_t @ XW1 + b1) @ W2   (W2 folded into layer 1)."""
    h = jnp.dot(adj_ref[...], xw1_ref[...], preferred_element_type=jnp.float32)
    h = jnp.maximum(h + b1_ref[...], 0.0)
    h1w2 = jnp.dot(h.astype(w2_ref.dtype), w2_ref[...],
                   preferred_element_type=jnp.float32)
    h1w2_ref[...] = h1w2.astype(h1w2_ref.dtype)


def gcn_layer2_kernel(adj_ref, h1w2_ref, b2_ref, out_ref, *, num_classes):
    """Per row tile: logits = Â_t @ H1W2 + b2 ; out = masked log_softmax(logits)."""
    logits = jnp.dot(adj_ref[...], h1w2_ref[...],
                     preferred_element_type=jnp.float32) + b2_ref[...]
    col = lax.broadcasted_iota(jnp.int32, logits.shape, 1)
    logits = jnp.where(col < num_classes, logits, -1e30)  # mask padded class lanes
    m = jnp.max(logits, axis=1, keepdims=True)
    s = logits - m
    lse = jnp.log(jnp.sum(jnp.exp(s), axis=1, keepdims=True))
    out_ref[...] = (s - lse).astype(out_ref.dtype)


# ---------------------------------------------------------------------------
# Graph-structure glue (plain JAX)
# ---------------------------------------------------------------------------
def build_normalized_adjacency(edge_index, num_nodes, num_nodes_padded=None):
    """Â[col, row] = deg^-1/2[row] * deg^-1/2[col] with self-loops (PyG GCNConv).

    Scatters directly into the padded buffer (single materialization).
    """
    if num_nodes_padded is None:
        num_nodes_padded = num_nodes
    row, col = edge_index[0], edge_index[1]
    loop = jnp.arange(num_nodes, dtype=edge_index.dtype)
    row = jnp.concatenate([row, loop])
    col = jnp.concatenate([col, loop])
    deg = jnp.zeros((num_nodes,), jnp.float32).at[col].add(1.0)
    dinv = jnp.where(deg > 0, 1.0 / jnp.sqrt(deg), 0.0)
    vals = dinv[row] * dinv[col]
    adj = jnp.zeros((num_nodes_padded, num_nodes_padded),
                    jnp.float32).at[col, row].add(vals)
    return adj


def _pad_to(v, m):
    return ((v + m - 1) // m) * m


# ---------------------------------------------------------------------------
# Wrapper: full Net.forward through two pallas_calls
# ---------------------------------------------------------------------------
def net_forward(x, edge_index, params, *, tm=256):
    n, f_in = x.shape
    hidden = params["w1"].shape[1]
    num_classes = params["w2"].shape[1]

    h_pad = max(LANE, _pad_to(hidden, LANE))
    c_pad = max(LANE, _pad_to(num_classes, LANE))
    n_pad = _pad_to(n, tm)
    num_tiles = n_pad // tm

    # Normalized adjacency, built straight into the padded buffer, cast once.
    adj_p = build_normalized_adjacency(edge_index, n, n_pad).astype(jnp.bfloat16)

    # Hoisted XW1 = X @ W1 in the wrapper (bf16 MXU inputs, f32 accumulation).
    xw1 = jnp.dot(x.astype(jnp.bfloat16), params["w1"].astype(jnp.bfloat16),
                  preferred_element_type=jnp.float32)
    xw1_p = jnp.zeros((n_pad, h_pad), jnp.bfloat16).at[:n, :hidden].set(
        xw1.astype(jnp.bfloat16))

    b1_p = jnp.zeros((1, h_pad), jnp.float32).at[0, :hidden].set(params["b1"])
    w2_p = jnp.zeros((h_pad, c_pad), jnp.bfloat16).at[:hidden, :num_classes].set(
        params["w2"].astype(jnp.bfloat16))
    b2_p = jnp.zeros((1, c_pad), jnp.float32).at[0, :num_classes].set(params["b2"])

    cparams = pltpu.CompilerParams(
        dimension_semantics=("parallel",),
        vmem_limit_bytes=VMEM_LIMIT_BYTES)

    # --- Layer 1 (+ ReLU, W2 folded) --------------------------------------
    h1w2_p = pl.pallas_call(
        gcn_layer1_kernel,
        out_shape=jax.ShapeDtypeStruct((n_pad, c_pad), jnp.bfloat16),
        grid_spec=pltpu.PrefetchScalarGridSpec(
            num_scalar_prefetch=0,
            grid=(num_tiles,),
            in_specs=[
                pl.BlockSpec((tm, n_pad), lambda t: (t, 0)),     # Â row tile
                pl.BlockSpec((n_pad, h_pad), lambda t: (0, 0)),  # XW1 (resident)
                pl.BlockSpec((1, h_pad), lambda t: (0, 0)),      # b1
                pl.BlockSpec((h_pad, c_pad), lambda t: (0, 0)),  # W2
            ],
            out_specs=pl.BlockSpec((tm, c_pad), lambda t: (t, 0)),
        ),
        compiler_params=cparams,
    )(adj_p, xw1_p, b1_p, w2_p)

    # --- Layer 2 (+ masked log_softmax) ------------------------------------
    out_p = pl.pallas_call(
        functools.partial(gcn_layer2_kernel, num_classes=num_classes),
        out_shape=jax.ShapeDtypeStruct((n_pad, c_pad), jnp.float32),
        grid_spec=pltpu.PrefetchScalarGridSpec(
            num_scalar_prefetch=0,
            grid=(num_tiles,),
            in_specs=[
                pl.BlockSpec((tm, n_pad), lambda t: (t, 0)),     # Â row tile
                pl.BlockSpec((n_pad, c_pad), lambda t: (0, 0)),  # H1W2 (resident)
                pl.BlockSpec((1, c_pad), lambda t: (0, 0)),      # b2
            ],
            out_specs=pl.BlockSpec((tm, c_pad), lambda t: (t, 0)),
        ),
        compiler_params=cparams,
    )(adj_p, h1w2_p, b2_p)

    return out_p[:n, :num_classes]


# ---------------------------------------------------------------------------
# Pure-JAX reference (numerically matched: same bf16 cast points / reassociation)
# ---------------------------------------------------------------------------
def net_forward_reference(x, edge_index, params):
    n = x.shape[0]
    adj = build_normalized_adjacency(edge_index, n).astype(jnp.bfloat16)
    w1 = params["w1"].astype(jnp.bfloat16)
    w2 = params["w2"].astype(jnp.bfloat16)

    xw1 = jnp.dot(x.astype(jnp.bfloat16), w1, preferred_element_type=jnp.float32)
    h1 = jnp.dot(adj, xw1.astype(jnp.bfloat16),
                 preferred_element_type=jnp.float32) + params["b1"]
    h1 = jnp.maximum(h1, 0.0)
    h1w2 = jnp.dot(h1.astype(jnp.bfloat16), w2, preferred_element_type=jnp.float32)
    logits = jnp.dot(adj, h1w2.astype(jnp.bfloat16),
                     preferred_element_type=jnp.float32) + params["b2"]
    return jax.nn.log_softmax(logits, axis=1)


# ---------------------------------------------------------------------------
# Main
# ---------------------------------------------------------------------------
if __name__ == "__main__":
    # Small synthetic stand-ins for Cora: N nodes, F features, 16 hidden, C classes.
    NUM_NODES = 384        # pads to 512 with TM=256 -> 2 row tiles per call
    NUM_FEATURES = 32
    HIDDEN = 16
    NUM_CLASSES = 8
    NUM_EDGES = 1024
    TM = 256               # larger row tile (amortizes per-step overhead, fills MXU M)

    key = jax.random.PRNGKey(0)
    kx, ke, kw1, kw2 = jax.random.split(key, 4)

    x = jax.random.normal(kx, (NUM_NODES, NUM_FEATURES), dtype=jnp.float32)
    edge_index = jax.random.randint(
        ke, (2, NUM_EDGES), 0, NUM_NODES, dtype=jnp.int32)

    def glorot(k, shape):
        fan_in, fan_out = shape
        scale = jnp.sqrt(6.0 / (fan_in + fan_out))
        return jax.random.uniform(k, shape, jnp.float32, -scale, scale)

    params = {
        "w1": glorot(kw1, (NUM_FEATURES, HIDDEN)),
        "b1": jnp.zeros((HIDDEN,), jnp.float32),
        "w2": glorot(kw2, (HIDDEN, NUM_CLASSES)),
        "b2": jnp.zeros((NUM_CLASSES,), jnp.float32),
    }

    out = net_forward(x, edge_index, params, tm=TM)
    out = jax.block_until_ready(out)

    ref = net_forward_reference(x, edge_index, params)
    assert out.shape == (NUM_NODES, NUM_CLASSES)
    assert jnp.allclose(out, ref, atol=1e-2, rtol=1e-2), "Pallas vs JAX mismatch"

    print("KERNEL_OK")
</pallas_src>

<mosaic_0001>
module attributes {stable_mosaic.version = 11 : i64} {
  func.func @gcn_layer1_kernel(%arg0: i32, %arg1: memref<256x512xbf16, #tpu.memory_space<vmem>>, %arg2: memref<512x128xbf16, #tpu.memory_space<vmem>>, %arg3: memref<1x128xf32, #tpu.memory_space<vmem>>, %arg4: memref<128x128xbf16, #tpu.memory_space<vmem>>, %arg5: memref<256x128xbf16, #tpu.memory_space<vmem>>) attributes {dimension_semantics = [#tpu.dimension_semantics<parallel>], iteration_bounds = array<i64: 2>, scalar_prefetch = 0 : i64, scratch_operands = 0 : i64, tpu.core_type = #tpu.core_type<tc>, window_params = [{transform_indices = @transform_0, window_bounds = array<i64: 256, 512>}, {pipeline_mode = #tpu.pipeline_mode<synchronous>, transform_indices = @transform_1, window_bounds = array<i64: 512, 128>}, {pipeline_mode = #tpu.pipeline_mode<synchronous>, transform_indices = @transform_2, window_bounds = array<i64: 1, 128>}, {pipeline_mode = #tpu.pipeline_mode<synchronous>, transform_indices = @transform_3, window_bounds = array<i64: 128, 128>}, {transform_indices = @transform_4, window_bounds = array<i64: 256, 128>}]} {
    %c0 = arith.constant 0 : index
    %c0_0 = arith.constant 0 : index
    %0 = vector.load %arg1[%c0, %c0_0] : memref<256x512xbf16, #tpu.memory_space<vmem>>, vector<256x512xbf16>
    %c0_1 = arith.constant 0 : index
    %c0_2 = arith.constant 0 : index
    %1 = vector.load %arg2[%c0_1, %c0_2] : memref<512x128xbf16, #tpu.memory_space<vmem>>, vector<512x128xbf16>
    %cst = arith.constant dense<0.000000e+00> : vector<256x128xf32>
    %2 = tpu.matmul %0, %1, %cst {dimension_numbers = #tpu.dot_dimension_numbers<[1], [0], [0], [1], [0, 0, 1, 1], [], []>} : vector<256x512xbf16>, vector<512x128xbf16>, vector<256x128xf32> -> vector<256x128xf32>
    %c0_3 = arith.constant 0 : index
    %c0_4 = arith.constant 0 : index
    %3 = vector.load %arg3[%c0_3, %c0_4] : memref<1x128xf32, #tpu.memory_space<vmem>>, vector<1x128xf32>
    %4 = vector.broadcast %3 : vector<1x128xf32> to vector<256x128xf32>
    %5 = arith.addf %2, %4 : vector<256x128xf32>
    %cst_5 = arith.constant 0.000000e+00 : f32
    %6 = vector.broadcast %cst_5 : f32 to vector<256x128xf32>
    %7 = arith.maximumf %5, %6 : vector<256x128xf32>
    %8 = arith.truncf %7 : vector<256x128xf32> to vector<256x128xbf16>
    %c0_6 = arith.constant 0 : index
    %c0_7 = arith.constant 0 : index
    %9 = vector.load %arg4[%c0_6, %c0_7] : memref<128x128xbf16, #tpu.memory_space<vmem>>, vector<128x128xbf16>
    %cst_8 = arith.constant dense<0.000000e+00> : vector<256x128xf32>
    %10 = tpu.matmul %8, %9, %cst_8 {dimension_numbers = #tpu.dot_dimension_numbers<[1], [0], [0], [1], [0, 0, 1, 1], [], []>} : vector<256x128xbf16>, vector<128x128xbf16>, vector<256x128xf32> -> vector<256x128xf32>
    %11 = arith.truncf %10 : vector<256x128xf32> to vector<256x128xbf16>
    %c0_9 = arith.constant 0 : index
    %c0_10 = arith.constant 0 : index
    %12 = vector.load %arg5[%c0_9, %c0_10] : memref<256x128xbf16, #tpu.memory_space<vmem>>, vector<256x128xbf16>
    tpu.vector_store %arg5[%c0_9, %c0_10], %11 {strides = array<i32>} : memref<256x128xbf16, #tpu.memory_space<vmem>>, vector<256x128xbf16>,
    return
  }
  func.func @transform_0(%arg0: i32) -> (i32, i32) {
    %c0_i32 = arith.constant 0 : i32
    %c0_i32_0 = arith.constant 0 : i32
    return %arg0, %c0_i32 : i32, i32
  }
  func.func @transform_1(%arg0: i32) -> (i32, i32) {
    %c0_i32 = arith.constant 0 : i32
    %c0_i32_0 = arith.constant 0 : i32
    %c0_i32_1 = arith.constant 0 : i32
    return %c0_i32, %c0_i32_0 : i32, i32
  }
  func.func @transform_2(%arg0: i32) -> (i32, i32) {
    %c0_i32 = arith.constant 0 : i32
    %c0_i32_0 = arith.constant 0 : i32
    %c0_i32_1 = arith.constant 0 : i32
    return %c0_i32, %c0_i32_0 : i32, i32
  }
  func.func @transform_3(%arg0: i32) -> (i32, i32) {
    %c0_i32 = arith.constant 0 : i32
    %c0_i32_0 = arith.constant 0 : i32
    %c0_i32_1 = arith.constant 0 : i32
    return %c0_i32, %c0_i32_0 : i32, i32
  }
  func.func @transform_4(%arg0: i32) -> (i32, i32) {
    %c0_i32 = arith.constant 0 : i32
    %c0_i32_0 = arith.constant 0 : i32
    return %arg0, %c0_i32 : i32, i32
  }
}

</mosaic_0001>

<bundles_post_ra>
// kernel: tpu_custom_call.1
= control target key start
LH: loop header
LB: loop body
LE: loop exit
PB: predicated region body
PF: predicated region fallthrough
CT: control target
= control target key end

     0   :  { %9 = vsyncpa [#allocation3], 0  ;;  %s3096_s0 = inlined_call_operand.hbm [shape: bf16[512,512], index: 0, kind: input, shape index: {}]   ;;  %s3097_s1 = inlined_call_operand.hbm [shape: bf16[512,128], index: 1, kind: input, shape index: {}]   ;;  %s3098_s2 = inlined_call_operand.vmem [shape: f32[1,128], index: 2, kind: input, shape index: {}]   ;;  %s3099_s3 = inlined_call_operand.hbm [shape: bf16[128,128], index: 3, kind: input, shape index: {}]   ;;  %s3100_s4 = inlined_call_operand.hbm [shape: bf16[512,128], index: 4, kind: output, shape index: {}]  }
   0x1   :  { %11 = vsyncpa [#allocation3 + $0x1], 0 }
   0x2   :  { %12 = vsyncpa [#allocation6], 0 }
   0x3   :  { %13 = vsyncpa [#allocation4], 0 }
   0x4   :  { %15 = vsyncpa [#allocation4 + $0x1], 0  ;;  %s2749_s15 = smov 0   ;;  %s2751_s16 = smov 0  }
   0x5   :  { %s2753_s17 = smov 0   ;;  %s2755_s18 = smov 0  }
   0x6 LB: > { %s2770_s19 = sadd.s32 4294967295, %s2712_s18   ;;  %s1757_s20 = sadd.s32 4294967294, %s2712_s18   ;;  %s2712_s18 = sphi %s2755_s18, %s3122_s18   ;;  %s2708_s17 = sphi %s2753_s17, %s3121_s17   ;;  %s2704_s16 = sphi %s2751_s16, %s3120_s16   ;;  %s2700_s15 = sphi %s2749_s15, %s3119_s15  }
   0x7   : > { %p41_p0 = scmp.ne.s32.totalorder %s2704_s16, %s2700_s15  ;;  %p3101_p1 = scmp.eq.s32.totalorder %s2770_s19, 0 }
   0x8   : > { %p134_p3 = scmp.eq.s32.totalorder %s1757_s20, 1  ;;  %p1758_p5 = scmp.ge.s32.totalorder %s2712_s18, 1 }
   0x9   : > { %p2779_p4 = por %p3101_p1, %p41_p0  ;;  %p141_p7 = scmp.lt.s32.totalorder %s2712_s18, 3 }
   0xa   : > { %p2784_p6 = por %p134_p3, %p41_p0  ;;  %s2714_s24 = smov [#allocation5]  }
   0xb   : > { %s3105_s21 = scalar_select %p2779_p4, 1, 0 }
   0xc   : > { %s3106_s22 = scalar_select %p2784_p6, 1, 0 }
   0xd   : > { %p2789_p8 = pnand %p1758_p5, %p141_p7  ;;  %s153_s25 = sshll.u32 %s2714_s24, 4  ;;  %s154_s25 = int_to_ptr.vmem [resolvable:$true] %s153_s25 }
   0xe   : > { %s2715_s27 = smov [#allocation7]   ;;  %s2575_s29 = scalar_lea.vmem %s154_s25, 4096 }
   0xf   : > { %s3107_s23 = scalar_select %p2789_p8, 1, 0 }
  0x10   : > { %p2367_p9 = pneg %p2789_p8  ;;  %s169_s28 = sshll.u32 %s2715_s27, 4  ;;  %s170_s28 = int_to_ptr.vmem [resolvable:$true] %s169_s28 }
  0x11   : > { %p2576_p13 = scmp.ne.s32.totalorder %s154_s25, %s2575_s29  ;;  %p2583_p5 = scmp.lt.s32.totalorder %s154_s25, %s154_s25 }
  0x12   : > { %p2798_p11 = pnand %p2367_p9, %p3101_p1  ;;  %p2584_p7 = scmp.lt.s32.totalorder %s2575_s29, %s2575_s29 }
  0x14   : > { %p2566_p12 = pneg %p2798_p11  ;;  %p2585_p10 = por %p2584_p7, %p2583_p5 }
  0x16   : > { %p2578_p0 = pnand %p2576_p13, %p2566_p12 }
  0x18   : > { %p2579_p3 = pneg %p2578_p0 }
  0x1a   : > { %p2586_p9 = pnand %p2585_p10, %p2579_p3 }
  0x1c   : > { %2589 = shalt.err (!%p2586_p9)
}
  0x1d   : > { %s2716_s30 = smov 64   ;;  %s2717_s5 = smov 4  }
  0x1e   : > { %2370 = dma.hbm_to_vmem [thread:$0]  (!%p2798_p11), %s3097_s1, 4096, %s154_s25, [#allocation6], %s2716_s30, %s2716_s30, %s2717_s5  }
  0x1f   : > { %s2601_s8 = scalar_lea.vmem %s170_s28, 1024  ;;  %p2609_p2 = scmp.lt.s32.totalorder %s170_s28, %s170_s28 }
  0x20   : > { %p2602_p1 = scmp.ne.s32.totalorder %s170_s28, %s2601_s8  ;;  %p2610_p6 = scmp.lt.s32.totalorder %s2601_s8, %s2601_s8 }
  0x22   : > { %p2604_p13 = pnand %p2602_p1, %p2566_p12  ;;  %p2611_p5 = por %p2610_p6, %p2609_p2 }
  0x24   : > { %p2605_p0 = pneg %p2604_p13 }
  0x26   : > { %p2612_p10 = pnand %p2611_p5, %p2605_p0 }
  0x28   : > { %2615 = shalt.err (!%p2612_p10)
}
  0x29   : > { %2373 = dma.hbm_to_vmem [thread:$0]  (!%p2798_p11), %s3099_s3, 1024, %s170_s28, [#allocation6], %s2716_s30, %s2716_s30, %s2717_s5  }
  0x2a   : > { %s2821_s11 = sadd.s32 1, %s2712_s18   ;;  %s28_s12 = sadd.s32 1, %s2708_s17 }
  0x2b   : > { %s25_s13 = ssub.s32 %s2712_s18, %s2821_s11  ;;  %p35_p1 = scmp.ne.s32.totalorder %s2708_s17, %s2704_s16 }
  0x2c   : > { %p26_p2 = scmp.eq.s32.totalorder %s25_s13, 0  ;;  %p36_p6 = scmp.eq.s32.totalorder %s2712_s18, 0 }
  0x2d   : > { %p3109_p12 = scmp.eq.s32.totalorder %s2770_s19, 1  ;;  %p2384_p7 = scmp.lt.s32.totalorder %s2712_s18, 2 }
  0x2e   : > { %s2837_s20 = scalar_select %p26_p2, %s2708_s17, %s28_s12  }
  0x2f   : > { %p2831_p3 = por %p3109_p12, %p35_p1  ;;  %p37_p9 = por %p36_p6, %p35_p1 }
  0x30   : > { %s183_s24 = sand.u32 1, %s2708_s17   ;;  %s1914_s26 = sshll.u32 %s2712_s18, 13 }
  0x31   : > { %s3110_s14 = scalar_select %p2831_p3, 1, 0 }
  0x32   : > { %s1762_s25 = sshll.u32 %s183_s24, 9  ;;  %s2844_s29 = scalar_lea.hbm %s3096_s0, %s1914_s26 }
  0x33   : > { %s187_s30 = scalar_lea.vmem [#allocation2], %s1762_s25  ;;  %p2848_p11 = pnand %p2384_p7, %p37_p9 }
  0x34   : > { %s195_s5 = sshll.u32 %s187_s30, 4  ;;  %s2852_s7 = scalar_lea.sflag [#allocation3], %s183_s24  ;;  %s2846_s5 = int_to_ptr.vmem [resolvable:$true] %s195_s5 }
  0x35   : > { %s2616_s8 = scalar_lea.hbm %s2844_s29, 8192  ;;  %p2618_p0 = pneg %p2848_p11 }
  0x36   : > { %p2617_p13 = scmp.ne.s32.totalorder %s2844_s29, %s2616_s8  ;;  %s2621_s12 = scalar_lea.hbm %s3096_s0, 16384 }
  0x37   : > { %p2622_p1 = scmp.lt.s32.totalorder %s2844_s29, %s3096_s0  ;;  %p2623_p2 = scmp.lt.s32.totalorder %s2621_s12, %s2616_s8 }
  0x38   : > { %p2619_p5 = pnand %p2618_p0, %p2617_p13 }
  0x39   : > { %p2624_p6 = por %p2623_p2, %p2622_p1 }
  0x3a   : > { %p2620_p10 = pneg %p2619_p5 }
  0x3c   : > { %p2625_p12 = pnand %p2624_p6, %p2620_p10 }
  0x3e   : > { %2628 = shalt.err (!%p2625_p12)
}
  0x3f   : > { %s2629_s24 = scalar_lea.vmem %s2846_s5, 8192  ;;  %s2718_s26 = smov [#allocation2]  }
  0x40   : > { %p2630_p7 = scmp.ne.s32.totalorder %s2846_s5, %s2629_s24  ;;  %s2634_s27 = sshll.u32 %s2718_s26, 4  ;;  %s2635_s27 = int_to_ptr.vmem [resolvable:$false] %s2634_s27 }
  0x41   : > { %s2636_s28 = scalar_lea.vmem %s2635_s27, 16384  ;;  %p2637_p5 = scmp.lt.s32.totalorder %s2846_s5, %s2635_s27 }
  0x42   : > { %p2632_p9 = pnand %p2630_p7, %p2618_p0  ;;  %p2638_p3 = scmp.lt.s32.totalorder %s2636_s28, %s2629_s24 }
  0x44   : > { %p2633_p13 = pneg %p2632_p9  ;;  %p2639_p4 = por %p2638_p3, %p2637_p5 }
  0x46   : > { %p2640_p8 = pnand %p2639_p4, %p2633_p13 }
  0x48   : > { %2643 = shalt.err (!%p2640_p8)
}
  0x49   : > { %s2719_s30 = smov 256   ;;  %s2720_s8 = smov 16  }
  0x4a   : > { %2377 = dma.hbm_to_vmem [thread:$0]  (!%p2848_p11), %s2844_s29, 8192, %s2846_s5, %s2852_s7, %s2719_s30, %s2719_s30, %s2720_s8  }
  0x4b   : > { %p3112_p0 = scmp.ne.s32.totalorder %s3107_s23, 0 }
  0x4c   : > { %s2876_s9 = sand.u32 (!%p3112_p0), 1, %s2704_s16   ;;  %p3113_p4 = scmp.ne.s32.totalorder (!%p3112_p0), %s3105_s21, 0 }
  0x4d   : > { %207 = sbr.rel (%p3112_p0) target bundleno = 693 (0x2b5), region = 36  ;;  %s1767_s10 = sshll.u32 (!%p3112_p0), %s2876_s9, 9 }
  0x4e   : > { %s210_s12 = scalar_lea.sflag (!%p3112_p0), [#allocation3], %s2876_s9  ;;  %s2880_s13 = scalar_lea.vmem (!%p3112_p0), [#allocation2], %s1767_s10 }
  0x52   : > { %2687 = dma.done.wait (%p3113_p4), %s210_s12, 8192  }
  0x53   : > { %2689 = vsyncadd (%p3113_p4), %s210_s12, 4294959104  ;;  %p3114_p8 = scmp.eq.s32.totalorder %s2770_s19, 0 }
  0x55   : > { %2691 = dma.done.wait (%p3114_p8), [#allocation6], 5120   ;;  %p3115_p3 = pmov %p3114_p8 }
  0x56   : > { %v2428_v0 = vld [vmem:[#allocation5 + $0x78] sm:$0xff]   ;;  %v2430_v2 = vld [vmem:[#allocation5 + $0x70] sm:$0xff]   ;;  %v2432_v4 = vld [vmem:[#allocation5 + $0x68] sm:$0xff]   ;;  %s1770_s29 = sshll.u32 %s2876_s9, 7  ;;  %s1947_s6 = sshll.u32 %s2770_s19, 11 }
  0x57   : > { %2693 = vsyncadd (%p3115_p3), [#allocation6], 4294962176  ;;  %v2429_v1 = vld [vmem:[#allocation5 + $0x38] sm:$0xff]   ;;  %2339 = vmatprep.subr.bf16.mxu1 %v2428_v0  ;;  %2043 = vmatprep.subr.bf16.mxu0 %v2428_v0  ;;  %v2431_v3 = vld [vmem:[#allocation5 + $0x30] sm:$0xff]   ;;  %s3028_s5 = scalar_lea.vmem [#allocation8], %s1770_s29  ;;  %s3049_s26 = scalar_lea.hbm %s3100_s4, %s1947_s6 }
  0x58   : > { %2347 = vmatpush3.bf16.msra.mxu1 %v2429_v1  ;;  %2044 = vmatpush3.bf16.msra.mxu0 %v2429_v1  ;;  %v2433_v5 = vld [vmem:[#allocation5 + $0x28] sm:$0xff]   ;;  %v2434_v6 = vld [vmem:[#allocation5 + $0x60] sm:$0xff]   ;;  %v2436_v8 = vld [vmem:[#allocation5 + $0x58] sm:$0xff]   ;;  %s1665_s7 = sshll.u32 %s3028_s5, 4  ;;  %s1652_s27 = scalar_lea.sflag [#allocation4], %s2876_s9  ;;  %s3051_s7 = int_to_ptr.vmem [resolvable:$true] %s1665_s7 }
  0x59   : > { %2340 = vmatprep.subr.bf16.mxu1 %v2430_v2  ;;  %2045 = vmatprep.subr.bf16.mxu0 %v2430_v2  ;;  %v2435_v7 = vld [vmem:[#allocation5 + $0x20] sm:$0xff]   ;;  %v2437_v9 = vld [vmem:[#allocation5 + $0x18] sm:$0xff]   ;;  %v2438_v10 = vld [vmem:[#allocation5 + $0x50] sm:$0xff]   ;;  %s2644_s28 = scalar_lea.vmem %s3051_s7, 2048  ;;  %p3116_p10 = scmp.ne.s32.totalorder %s3110_s14, 0 }
  0x5a   : > { %v2446_v11 = vld [vmem:[%s2880_s13 + $0x184] ss:$16 sps:$4 sm:$0xff]   ;;  %v2440_v13 = vld [vmem:[#allocation5 + $0x48] sm:$0xff]   ;;  %v2447_v17 = vld [vmem:[#allocation5 + $0xf8] sm:$0xff]   ;;  %p2645_p11 = scmp.ne.s32.totalorder %s3051_s7, %s2644_s28  ;;  %s2721_s19 = smov [#allocation8]  }
  0x5b   : > { %v2439_v12 = vld [vmem:[#allocation5 + $0x10] sm:$0xff]   ;;  %1024 = vmatprep.mubr.bf16.mxu1 %v2446_v11  ;;  %v2441_v14 = vld [vmem:[#allocation5 + $0x8] sm:$0xff]   ;;  %v2442_v15 = vld [vmem:[#allocation5 + $0x40] sm:$0xff]   ;;  %s2648_s30 = sshll.u32 %s2721_s19, 4  ;;  %s2649_s30 = int_to_ptr.vmem [resolvable:$false] %s2648_s30 }
  0x5c   : > { %2348 = vmatpush3.bf16.msra.mxu1 %v2431_v3  ;;  %2046 = vmatpush3.bf16.msra.mxu0 %v2431_v3  ;;  %v2443_v16 = vld [vmem:[#allocation5] sm:$0xff]   ;;  %v2448_v19 = vld [vmem:[#allocation5 + $0xb8] sm:$0xff]   ;;  %v2449_v21 = vld [vmem:[#allocation5 + $0xf0] sm:$0xff]   ;;  %p2646_p1 = pnand %p2645_p11, %p3116_p10  ;;  %s2650_s8 = scalar_lea.vmem %s2649_s30, 4096 }
  0x5d   : > { %2341 = vmatprep.subr.bf16.mxu1 %v2432_v4  ;;  %2047 = vmatprep.subr.bf16.mxu0 %v2432_v4  ;;  %v2444_v18 = vld [vmem:[%s2880_s13 + $0x180] ss:$16 sps:$4 sm:$0xff]   ;;  %v2451_v20 = vld [vmem:[%s2880_s13 + $0x1a4] ss:$16 sps:$4 sm:$0xff]   ;;  %v2454_v24 = vld [vmem:[#allocation5 + $0xe8] sm:$0xff]   ;;  %p2651_p6 = scmp.lt.s32.totalorder %s3051_s7, %s2649_s30  ;;  %p2652_p12 = scmp.lt.s32.totalorder %s2650_s8, %s2644_s28 }
  0x5e   : > { %v2450_v22 = vld [vmem:[#allocation5 + $0xb0] sm:$0xff]   ;;  %v2455_v27 = vld [vmem:[#allocation5 + $0xa8] sm:$0xff]   ;;  %v2456_v28 = vld [vmem:[#allocation5 + $0xe0] sm:$0xff]   ;;  %p2647_p2 = pneg %p2646_p1 }
  0x5f   : > { %v2453_v23 = vld [vmem:[%s2880_s13 + $0x1a0] ss:$16 sps:$4 sm:$0xff]   ;;  %v2473_v26 = vld [vmem:[%s2880_s13 + $0x4] ss:$16 sps:$4 sm:$0xff]   ;;  %v2461_v32 = vld [vmem:[#allocation5 + $0xd8] sm:$0xff]   ;;  %p2653_p7 = por %p2652_p12, %p2651_p6 }
  0x60   : > { %2349 = vmatpush3.bf16.msra.mxu1 %v2433_v5  ;;  %2048 = vmatpush3.bf16.msra.mxu0 %v2433_v5  ;;  %v2471_v25 = vld [vmem:[%s2880_s13] ss:$16 sps:$4 sm:$0xff]   ;;  %v2458_v29 = vld [vmem:[%s2880_s13 + $0x1c4] ss:$16 sps:$4 sm:$0xff]   ;;  %v2462_v36 = vld [vmem:[#allocation5 + $0x98] sm:$0xff]  }
  0x61   : > { %2342 = vmatprep.subr.bf16.mxu1 %v2434_v6  ;;  %2049 = vmatprep.subr.bf16.mxu0 %v2434_v6  ;;  %v2478_v30 = vld [vmem:[%s2880_s13 + $0x24] ss:$16 sps:$4 sm:$0xff]   ;;  %v2480_v33 = vld [vmem:[%s2880_s13 + $0x20] ss:$16 sps:$4 sm:$0xff]   ;;  %v2468_v40 = vld [vmem:[#allocation5 + $0xc8] sm:$0xff]   ;;  %p2654_p9 = pnand %p2653_p7, %p2647_p2 }
  0x62   : > { %928 = vmatprep.mubr.bf16.mxu0 %v2473_v26  ;;  %v2457_v31 = vld [vmem:[#allocation5 + $0xa0] sm:$0xff]   ;;  %v2463_v38 = vld [vmem:[#allocation5 + $0xd0] sm:$0xff]   ;;  %v2469_v44 = vld [vmem:[#allocation5 + $0x88] sm:$0xff]  }
  0x63   : > { %v2484_v34 = vld [vmem:[%s2880_s13 + $0x44] ss:$16 sps:$4 sm:$0xff]   ;;  %v2460_v35 = vld [vmem:[%s2880_s13 + $0x1c0] ss:$16 sps:$4 sm:$0xff]   ;;  %v2477_v45 = vld [vmem:[%s2880_s13 + $0xc] ss:$16 sps:$4 sm:$0xff]  }
  0x64   : > { %2350 = vmatpush3.bf16.msra.mxu1 %v2435_v7  ;;  %2050 = vmatpush3.bf16.msra.mxu0 %v2435_v7  ;;  %v2465_v37 = vld [vmem:[%s2880_s13 + $0x1e4] ss:$16 sps:$4 sm:$0xff]   ;;  %v2486_v41 = vld [vmem:[%s2880_s13 + $0x40] ss:$16 sps:$4 sm:$0xff]   ;;  %v2475_v50 = vld [vmem:[%s2880_s13 + $0x8] ss:$16 sps:$4 sm:$0xff]  }
  0x65   : > { %2343 = vmatprep.subr.bf16.mxu1 %v2436_v8  ;;  %2051 = vmatprep.subr.bf16.mxu0 %v2436_v8  ;;  %v2464_v39 = vld [vmem:[#allocation5 + $0x90] sm:$0xff]   ;;  %v2470_v46 = vld [vmem:[#allocation5 + $0xc0] sm:$0xff]   ;;  %v2481_v51 = vld [vmem:[%s2880_s13 + $0x2c] ss:$16 sps:$4 sm:$0xff]  }
  0x66   : > { %v2490_v42 = vld [vmem:[%s2880_s13 + $0x64] ss:$16 sps:$4 sm:$0xff]   ;;  %v2467_v43 = vld [vmem:[%s2880_s13 + $0x1e0] ss:$16 sps:$4 sm:$0xff]   ;;  %v2483_v54 = vld [vmem:[%s2880_s13 + $0x28] ss:$16 sps:$4 sm:$0xff]  }
  0x67   : > { %v2474_v47 = vld [vmem:[#allocation5 + $0x80] sm:$0xff]   ;;  %v2487_v55 = vld [vmem:[%s2880_s13 + $0x4c] ss:$16 sps:$4 sm:$0xff]   ;;  %v2489_v58 = vld [vmem:[%s2880_s13 + $0x48] ss:$16 sps:$4 sm:$0xff]  }
  0x68   : > { %2351 = vmatpush3.bf16.msra.mxu1 %v2437_v9  ;;  %2052 = vmatpush3.bf16.msra.mxu0 %v2437_v9  ;;  %v2492_v48 = vld [vmem:[%s2880_s13 + $0x60] ss:$16 sps:$4 sm:$0xff]   ;;  %v2496_v49 = vld [vmem:[%s2880_s13 + $0x84] ss:$16 sps:$4 sm:$0xff]   ;;  %v2493_v59 = vld [vmem:[%s2880_s13 + $0x6c] ss:$16 sps:$4 sm:$0xff]  }
  0x69   : > { %2344 = vmatprep.subr.bf16.mxu1 %v2438_v10  ;;  %2053 = vmatprep.subr.bf16.mxu0 %v2438_v10  ;;  %v2498_v52 = vld [vmem:[%s2880_s13 + $0x80] ss:$16 sps:$4 sm:$0xff]   ;;  %v2502_v53 = vld [vmem:[%s2880_s13 + $0xa4] ss:$16 sps:$4 sm:$0xff]   ;;  %v2495_v62 = vld [vmem:[%s2880_s13 + $0x68] ss:$16 sps:$4 sm:$0xff]  }
  0x6a   : > { %v2504_v56 = vld [vmem:[%s2880_s13 + $0xa0] ss:$16 sps:$4 sm:$0xff]   ;;  %v2508_v57 = vld [vmem:[%s2880_s13 + $0xc4] ss:$16 sps:$4 sm:$0xff]   ;;  %v2499_v63 = vld [vmem:[%s2880_s13 + $0x8c] ss:$16 sps:$4 sm:$0xff]  }
  0x6b   : > { %v2510_v60 = vld [vmem:[%s2880_s13 + $0xc0] ss:$16 sps:$4 sm:$0xff]   ;;  %v2514_v61 = vld [vmem:[%s2880_s13 + $0xe4] ss:$16 sps:$4 sm:$0xff]   ;;  %v2501_v2 = vld [vmem:[%s2880_s13 + $0x88] ss:$16 sps:$4 sm:$0xff]  }
  0x6c   : > { %2352 = vmatpush3.bf16.msra.mxu1 %v2439_v12  ;;  %2054 = vmatpush3.bf16.msra.mxu0 %v2439_v12  ;;  %v2516_v0 = vld [vmem:[%s2880_s13 + $0xe0] ss:$16 sps:$4 sm:$0xff]   ;;  %v2520_v1 = vld [vmem:[%s2880_s13 + $0x104] ss:$16 sps:$4 sm:$0xff]   ;;  %v2505_v3 = vld [vmem:[%s2880_s13 + $0xac] ss:$16 sps:$4 sm:$0xff]  }
  0x6d   : > { %2345 = vmatprep.subr.bf16.mxu1 %v2440_v13  ;;  %2055 = vmatprep.subr.bf16.mxu0 %v2440_v13  ;;  %v2522_v4 = vld [vmem:[%s2880_s13 + $0x100] ss:$16 sps:$4 sm:$0xff]   ;;  %v2526_v5 = vld [vmem:[%s2880_s13 + $0x124] ss:$16 sps:$4 sm:$0xff]   ;;  %v2507_v6 = vld [vmem:[%s2880_s13 + $0xa8] ss:$16 sps:$4 sm:$0xff]  }
  0x6e   : > { %v2511_v7 = vld [vmem:[%s2880_s13 + $0xcc] ss:$16 sps:$4 sm:$0xff]   ;;  %v2528_v8 = vld [vmem:[%s2880_s13 + $0x120] ss:$16 sps:$4 sm:$0xff]   ;;  %v2532_v9 = vld [vmem:[%s2880_s13 + $0x144] ss:$16 sps:$4 sm:$0xff]  }
  0x6f   : > { %v2513_v10 = vld [vmem:[%s2880_s13 + $0xc8] ss:$16 sps:$4 sm:$0xff]   ;;  %v2517_v11 = vld [vmem:[%s2880_s13 + $0xec] ss:$16 sps:$4 sm:$0xff]   ;;  %v2534_v13 = vld [vmem:[%s2880_s13 + $0x140] ss:$16 sps:$4 sm:$0xff]  }
  0x70   : > { %2353 = vmatpush3.bf16.msra.mxu1 %v2441_v14  ;;  %2056 = vmatpush3.bf16.msra.mxu0 %v2441_v14  ;;  %v2556_v12 = vld [vmem:[#allocation7 + $0x38] sm:$0xff]   ;;  %v2538_v14 = vld [vmem:[%s2880_s13 + $0x164] ss:$16 sps:$4 sm:$0xff]  }
  0x71   : > { %2346 = vmatprep.subr.bf16.mxu1 %v2442_v15  ;;  %2057 = vmatprep.subr.bf16.mxu0 %v2442_v15  ;;  %v2519_v15 = vld [vmem:[%s2880_s13 + $0xe8] ss:$16 sps:$4 sm:$0xff]   ;;  %v2561_v26 = vld [vmem:[#allocation7 + $0x10] sm:$0xff]  }
  0x74   : > { %2354 = vmatpush3.bf16.msra.mxu1 %v2443_v16  ;;  %2058 = vmatpush3.bf16.msra.mxu0 %v2443_v16  ;;  %v2523_v16 = vld [vmem:[%s2880_s13 + $0x10c] ss:$16 sps:$4 sm:$0xff]  }
  0x75   : > { %2155 = vmatprep.subr.bf16.mxu1 %v2447_v17  ;;  %2291 = vmatprep.subr.bf16.mxu0 %v2556_v12  ;;  %v2557_v17 = vld [vmem:[#allocation7 + $0x30] sm:$0xff]  }
  0x77   : > { %1025 = vmatmul.mubr.bf16.vlgmr.msra.gmra.mxu1 %v2444_v18  ;;  %929 = vmatmul.mubr.bf16.vlgmr.msra.gmra.mxu0 %v2471_v25  ;;  %v2540_v18 = vld [vmem:[%s2880_s13 + $0x160] ss:$16 sps:$4 sm:$0xff]   ;;  %v2560_v25 = vld [vmem:[#allocation7 + $0x18] sm:$0xff]  }
  0x78   : > { %2156 = vmatpush3.bf16.msra.mxu1 %v2448_v19  ;;  %1032 = vmatprep.mubr.bf16.mxu1 %v2451_v20  ;;  %v2525_v19 = vld [vmem:[%s2880_s13 + $0x108] ss:$16 sps:$4 sm:$0xff]   ;;  %v2529_v20 = vld [vmem:[%s2880_s13 + $0x12c] ss:$16 sps:$4 sm:$0xff]  }
  0x79   : > { %2157 = vmatprep.subr.bf16.mxu1 %v2449_v21  ;;  %936 = vmatprep.mubr.bf16.mxu0 %v2478_v30  ;;  %v2558_v21 = vld [vmem:[#allocation7 + $0x28] sm:$0xff]   ;;  %v2563_v30 = vld [vmem:[#allocation7] sm:$0xff]  }
  0x7a   : > { %2292 = vmatpush3.bf16.msra.mxu0 %v2556_v12 }
  0x7b   : > { %2293 = vmatprep.subr.bf16.mxu0 %v2557_v17 }
  0x7c   : > { %2158 = vmatpush3.bf16.msra.mxu1 %v2450_v22  ;;  %v2559_v22 = vld [vmem:[#allocation7 + $0x20] sm:$0xff]  }
  0x7d   : > { %2159 = vmatprep.subr.bf16.mxu1 %v2454_v24  ;;  %v2535_v24 = vld [vmem:[%s2880_s13 + $0x14c] ss:$16 sps:$4 sm:$0xff]  }
  0x7e   : > { %2294 = vmatpush3.bf16.msra.mxu0 %v2557_v17  ;;  %v2973_v17 = vld [vmem:[%s3098_s2] ss:$0 sm:$0xff] }
  0x7f   : > { %1033 = vmatmul.mubr.bf16.gmra.mxu1 %v2453_v23  ;;  %937 = vmatmul.mubr.bf16.gmra.mxu0 %v2480_v33  ;;  %v2531_v23 = vld [vmem:[%s2880_s13 + $0x128] ss:$16 sps:$4 sm:$0xff]  }
  0x80   : > { %2160 = vmatpush3.bf16.msra.mxu1 %v2455_v27  ;;  %1040 = vmatprep.mubr.bf16.mxu1 %v2458_v29  ;;  %v2537_v27 = vld [vmem:[%s2880_s13 + $0x148] ss:$16 sps:$4 sm:$0xff]  }
  0x81   : > { %2161 = vmatprep.subr.bf16.mxu1 %v2456_v28  ;;  %944 = vmatprep.mubr.bf16.mxu0 %v2484_v34  ;;  %v2541_v28 = vld [vmem:[%s2880_s13 + $0x16c] ss:$16 sps:$4 sm:$0xff]   ;;  %v2546_v33 = vld [vmem:[%s2880_s13 + $0x188] ss:$16 sps:$4 sm:$0xff]  }
  0x82   : > { %2295 = vmatprep.subr.bf16.mxu0 %v2558_v21  ;;  %v2562_v29 = vld [vmem:[#allocation7 + $0x8] sm:$0xff]  }
  0x83   : > { %2296 = vmatpush3.bf16.msra.mxu0 %v2558_v21  ;;  %v2547_v34 = vld [vmem:[%s2880_s13 + $0x1ac] ss:$16 sps:$4 sm:$0xff]  }
  0x84   : > { %2162 = vmatpush3.bf16.msra.mxu1 %v2457_v31  ;;  %2297 = vmatprep.subr.bf16.mxu0 %v2559_v22  ;;  %v2543_v31 = vld [vmem:[%s2880_s13 + $0x168] ss:$16 sps:$4 sm:$0xff]  }
  0x85   : > { %2163 = vmatprep.subr.bf16.mxu1 %v2461_v32  ;;  %v2544_v32 = vld [vmem:[%s2880_s13 + $0x18c] ss:$16 sps:$4 sm:$0xff]  }
  0x87   : > { %1041 = vmatmul.mubr.bf16.gmra.mxu1 %v2460_v35  ;;  %945 = vmatmul.mubr.bf16.gmra.mxu0 %v2486_v41  ;;  %v2549_v35 = vld [vmem:[%s2880_s13 + $0x1a8] ss:$16 sps:$4 sm:$0xff]  }
  0x88   : > { %2164 = vmatpush3.bf16.msra.mxu1 %v2462_v36  ;;  %1048 = vmatprep.mubr.bf16.mxu1 %v2465_v37  ;;  %v2550_v36 = vld [vmem:[%s2880_s13 + $0x1cc] ss:$16 sps:$4 sm:$0xff]   ;;  %v2552_v37 = vld [vmem:[%s2880_s13 + $0x1c8] ss:$16 sps:$4 sm:$0xff]  }
  0x89   : > { %2165 = vmatprep.subr.bf16.mxu1 %v2463_v38  ;;  %952 = vmatprep.mubr.bf16.mxu0 %v2490_v42  ;;  %v2553_v38 = vld [vmem:[%s2880_s13 + $0x1ec] ss:$16 sps:$4 sm:$0xff]  }
  0x8a   : > { %2298 = vmatpush3.bf16.msra.mxu0 %v2559_v22 }
  0x8b   : > { %2299 = vmatprep.subr.bf16.mxu0 %v2560_v25 }
  0x8c   : > { %2166 = vmatpush3.bf16.msra.mxu1 %v2464_v39  ;;  %v2555_v39 = vld [vmem:[%s2880_s13 + $0x1e8] ss:$16 sps:$4 sm:$0xff]  }
  0x8d   : > { %2167 = vmatprep.subr.bf16.mxu1 %v2468_v40 }
  0x8e   : > { %2300 = vmatpush3.bf16.msra.mxu0 %v2560_v25 }
  0x8f   : > { %1049 = vmatmul.mubr.bf16.gmra.mxu1 %v2467_v43  ;;  %953 = vmatmul.mubr.bf16.gmra.mxu0 %v2492_v48 }
  0x90   : > { %2168 = vmatpush3.bf16.msra.mxu1 %v2469_v44  ;;  %1089 = vmatprep.mubr.bf16.mxu1 %v2477_v45 }
  0x91   : > { %2169 = vmatprep.subr.bf16.mxu1 %v2470_v46  ;;  %960 = vmatprep.mubr.bf16.mxu0 %v2496_v49 }
  0x92   : > { %2301 = vmatprep.subr.bf16.mxu0 %v2561_v26 }
  0x93   : > { %2302 = vmatpush3.bf16.msra.mxu0 %v2561_v26 }
  0x94   : > { %2170 = vmatpush3.bf16.msra.mxu1 %v2474_v47  ;;  %2303 = vmatprep.subr.bf16.mxu0 %v2562_v29 }
  0x97   : > { %1090 = vmatmul.mubr.bf16.vlgmr.msra.gmra.mxu1 %v2475_v50  ;;  %961 = vmatmul.mubr.bf16.gmra.mxu0 %v2498_v52 }
  0x98   : > { %1097 = vmatprep.mubr.bf16.mxu1 %v2481_v51  ;;  %968 = vmatprep.mubr.bf16.mxu0 %v2502_v53 }
  0x99   : > { %2304 = vmatpush3.bf16.msra.mxu0 %v2562_v29 }
  0x9a   : > { %2305 = vmatprep.subr.bf16.mxu0 %v2563_v30 }
  0x9d   : > { %2306 = vmatpush3.bf16.msra.mxu0 %v2563_v30 }
  0x9f   : > { %1098 = vmatmul.mubr.bf16.gmra.mxu1 %v2483_v54  ;;  %969 = vmatmul.mubr.bf16.gmra.mxu0 %v2504_v56 }
  0xa0   : > { %1105 = vmatprep.mubr.bf16.mxu1 %v2487_v55  ;;  %976 = vmatprep.mubr.bf16.mxu0 %v2508_v57 }
  0xa7   : > { %1106 = vmatmul.mubr.bf16.gmra.mxu1 %v2489_v58  ;;  %977 = vmatmul.mubr.bf16.gmra.mxu0 %v2510_v60 }
  0xa8   : > { %1113 = vmatprep.mubr.bf16.mxu1 %v2493_v59  ;;  %984 = vmatprep.mubr.bf16.mxu0 %v2514_v61 }
  0xaf   : > { %1114 = vmatmul.mubr.bf16.gmra.mxu1 %v2495_v62  ;;  %985 = vmatmul.mubr.bf16.gmra.mxu0 %v2516_v0 }
  0xb0   : > { %1121 = vmatprep.mubr.bf16.mxu1 %v2499_v63  ;;  %992 = vmatprep.mubr.bf16.mxu0 %v2520_v1 }
  0xb7   : > { %1122 = vmatmul.mubr.bf16.gmra.mxu1 %v2501_v2  ;;  %993 = vmatmul.mubr.bf16.gmra.mxu0 %v2522_v4 }
  0xb8   : > { %1129 = vmatprep.mubr.bf16.mxu1 %v2505_v3  ;;  %1000 = vmatprep.mubr.bf16.mxu0 %v2526_v5 }
  0xbf   : > { %1130 = vmatmul.mubr.bf16.gmra.mxu1 %v2507_v6  ;;  %1001 = vmatmul.mubr.bf16.gmra.mxu0 %v2528_v8 }
  0xc0   : > { %1137 = vmatprep.mubr.bf16.mxu1 %v2511_v7  ;;  %1008 = vmatprep.mubr.bf16.mxu0 %v2532_v9 }
  0xc7   : > { %1138 = vmatmul.mubr.bf16.gmra.mxu1 %v2513_v10  ;;  %1009 = vmatmul.mubr.bf16.gmra.mxu0 %v2534_v13 }
  0xc8   : > { %1145 = vmatprep.mubr.bf16.mxu1 %v2517_v11  ;;  %1016 = vmatprep.mubr.bf16.mxu0 %v2538_v14 }
  0xcf   : > { %1146 = vmatmul.mubr.bf16.gmra.mxu1 %v2519_v15  ;;  %1017 = vmatmul.mubr.bf16.gmra.mxu0 %v2540_v18 }
  0xd0   : > { %1153 = vmatprep.mubr.bf16.mxu1 %v2523_v16 }
  0xd7   : > { %1154 = vmatmul.mubr.bf16.gmra.mxu1 %v2525_v19 }
  0xd8   : > { %1161 = vmatprep.mubr.bf16.mxu1 %v2529_v20 }
  0xdf   : > { %1162 = vmatmul.mubr.bf16.gmra.mxu1 %v2531_v23 }
  0xe0   : > { %1169 = vmatprep.mubr.bf16.mxu1 %v2535_v24 }
  0xe7   : > { %1170 = vmatmul.mubr.bf16.gmra.mxu1 %v2537_v27 }
  0xe8   : > { %1177 = vmatprep.mubr.bf16.mxu1 %v2541_v28 }
  0xef   : > { %1178 = vmatmul.mubr.bf16.gmra.mxu1 %v2543_v31 }
  0xf0   : > { %1185 = vmatprep.mubr.bf16.mxu1 %v2544_v32 }
  0xf7   : > { %1186 = vmatmul.mubr.bf16.gmra.mxu1 %v2546_v33 }
  0xf8   : > { %1193 = vmatprep.mubr.bf16.mxu1 %v2547_v34 }
  0xff   : > { %1194 = vmatmul.mubr.bf16.gmra.mxu1 %v2549_v35 }
 0x100   : > { %1201 = vmatprep.mubr.bf16.mxu1 %v2550_v36 }
 0x107   : > { %1202 = vmatmul.mubr.bf16.gmra.mxu1 %v2552_v37 }
 0x108   : > { %1209 = vmatprep.mubr.bf16.mxu1 %v2553_v38 }
 0x10f   : > { %1210 = vmatmul.mubr.bf16.gmra.mxu1 %v2555_v39 }
 0x137   : > { %v2131_v40 = vpop.f32.mrf.mxu1  ;;  %v2059_v45 = vpop.f32.mrf.mxu0 }
 0x139   : > { %v2132_v41 = vpop.f32.mrf.mxu1  ;;  %v2060_v48 = vpop.f32.mrf.mxu0 }
 0x13a   : > { %v2954_v42 = vadd.f32 %v2132_v41, %v2131_v40  ;;  %v2061_v13 = vadd.f32 %v2060_v48, %v2059_v45 }
 0x13b   : > { %v2134_v43 = vpop.f32.mrf.mxu1  ;;  %v2062_v50 = vpop.f32.mrf.mxu0 }
 0x13c   : > { %v931_v20 = vadd.f32 %v2061_v13, %v2973_v17 }
 0x13d   : > { %v2135_v44 = vpop.f32.mrf.mxu1  ;;  %v2063_v53 = vpop.f32.mrf.mxu0 }
 0x13e   : > { %v2956_v46 = vadd.f32 %v2135_v44, %v2134_v43  ;;  %v2064_v16 = vadd.f32 %v2063_v53, %v2062_v50 }
 0x13f   : > { %v2137_v47 = vpop.f32.mrf.mxu1  ;;  %v2065_v55 = vpop.f32.mrf.mxu0 }
 0x140   : > { %v934_v24 = vadd.f32 %v2064_v16, %v2973_v17 }
 0x141   : > { %v2138_v49 = vpop.f32.mrf.mxu1  ;;  %v2066_v58 = vpop.f32.mrf.mxu0 }
 0x142   : > { %v2958_v51 = vadd.f32 %v2138_v49, %v2137_v47  ;;  %v2067_v29 = vadd.f32 %v2066_v58, %v2065_v55 }
 0x143   : > { %v2140_v52 = vpop.f32.mrf.mxu1  ;;  %v2068_v60 = vpop.f32.mrf.mxu0 }
 0x144   : > { %v939_v38 = vadd.f32 %v2067_v29, %v2973_v17 }
 0x145   : > { %v2141_v54 = vpop.f32.mrf.mxu1  ;;  %v2069_v63 = vpop.f32.mrf.mxu0 }
 0x146   : > { %v2960_v56 = vadd.f32 %v2141_v54, %v2140_v52  ;;  %v2070_v33 = vadd.f32 %v2069_v63, %v2068_v60 }
 0x147   : > { %v2143_v57 = vpop.f32.mrf.mxu1  ;;  %v2071_v1 = vpop.f32.mrf.mxu0 }
 0x148   : > { %v942_v43 = vadd.f32 %v2070_v33, %v2973_v17 }
 0x149   : > { %v2144_v59 = vpop.f32.mrf.mxu1  ;;  %v2072_v4 = vpop.f32.mrf.mxu0 }
 0x14a   : > { %v2962_v61 = vadd.f32 %v2144_v59, %v2143_v57  ;;  %v2073_v50 = vadd.f32 %v2072_v4, %v2071_v1 }
 0x14b   : > { %v2146_v62 = vpop.f32.mrf.mxu1  ;;  %v2074_v6 = vpop.f32.mrf.mxu0 }
 0x14d   : > { %v2147_v0 = vpop.f32.mrf.mxu1  ;;  %v2075_v9 = vpop.f32.mrf.mxu0 }
 0x14e   : > { %v2964_v2 = vadd.f32 %v2147_v0, %v2146_v62  ;;  %v2076_v55 = vadd.f32 %v2075_v9, %v2074_v6  ;;  %v947_v62 = vadd.f32 %v2073_v50, %v2973_v17 }
 0x14f   : > { %v2149_v3 = vpop.f32.mrf.mxu1  ;;  %v2077_v11 = vpop.f32.mrf.mxu0 }
 0x151   : > { %v2150_v5 = vpop.f32.mrf.mxu1  ;;  %v2078_v15 = vpop.f32.mrf.mxu0 }
 0x152   : > { %v2966_v7 = vadd.f32 %v2150_v5, %v2149_v3 }
 0x153   : > { %v2152_v8 = vpop.f32.mrf.mxu1  ;;  %v2080_v19 = vpop.f32.mrf.mxu0 }
 0x155   : > { %v2153_v10 = vpop.f32.mrf.mxu1  ;;  %v2081_v23 = vpop.f32.mrf.mxu0 }
 0x156   : > { %v2968_v12 = vadd.f32 %v2153_v10, %v2152_v8  ;;  %v950_v8 = vadd.f32 %v2076_v55, %v2973_v17 }
 0x157   : > { %v2171_v14 = vpop.f32.mrf.mxu1  ;;  %v2977_v26 = vpop.f32.mrf.mxu0 }
 0x159   : > { %v2172_v18 = vpop.f32.mrf.mxu1  ;;  %v2084_v31 = vpop.f32.mrf.mxu0 }
 0x15a   : > { %v2173_v21 = vadd.f32 %v2172_v18, %v2171_v14  ;;  %v2079_v14 = vadd.f32 %v2078_v15, %v2077_v11  ;;  %v2082_v18 = vadd.f32 %v2081_v23, %v2080_v19  ;;  %v2085_v19 = vadd.f32 %v2084_v31, %v2977_v26 }
 0x15b   : > { %v2174_v22 = vpop.f32.mrf.mxu1  ;;  %v2086_v35 = vpop.f32.mrf.mxu0 }
 0x15c   : > { %v1092_v27 = vadd.f32 %v2173_v21, %v931_v20 }
 0x15d   : > { %v2175_v25 = vpop.f32.mrf.mxu1  ;;  %v2087_v41 = vpop.f32.mrf.mxu0 }
 0x15e   : > { %v2176_v28 = vadd.f32 %v2175_v25, %v2174_v22  ;;  %v1218_v36 = vmax.f32 %v1092_v27, 0.0  ;;  %v955_v25 = vadd.f32 %v2079_v14, %v2973_v17 }
 0x15f   : > { %v2177_v30 = vpop.f32.mrf.mxu1  ;;  %v2981_v47 = vpop.f32.mrf.mxu0 }
 0x160   : > { %v1095_v32 = vadd.f32 %v2176_v28, %v934_v24 }
 0x161   : > { %v2178_v34 = vpop.f32.mrf.mxu1  ;;  %v2090_v53 = vpop.f32.mrf.mxu0 }
 0x162   : > { %v1219_v37 = vmax.f32 %v1095_v32, 0.0  ;;  %v2179_v39 = vadd.f32 %v2178_v34, %v2177_v30  ;;  %v958_v30 = vadd.f32 %v2082_v18, %v2973_v17  ;;  %v2091_v31 = vadd.f32 %v2090_v53, %v2981_v47 }
 0x163   : > { %v2180_v40 = vpop.f32.mrf.mxu1  ;;  %v2092_v58 = vpop.f32.mrf.mxu0 }
 0x164   : > { %v1250_v44 = vpack.c.bf16 %v1219_v37, %v1218_v36  ;;  %v1100_v48 = vadd.f32 %v2179_v39, %v939_v38  ;;  %v2088_v38 = vadd.f32 %v2087_v41, %v2086_v35 }
 0x165   : > { %v2181_v45 = vpop.f32.mrf.mxu1  ;;  %v2093_v3 = vpop.f32.mrf.mxu0 }
 0x166   : > { %v2182_v49 = vadd.f32 %v2181_v45, %v2180_v40  ;;  %2307 = vmatprep.mubr.bf16.mxu0 %v1250_v44  ;;  %v1220_v59 = vmax.f32 %v1100_v48, 0.0  ;;  %v963_v45 = vadd.f32 %v2085_v19, %v2973_v17 }
 0x167   : > { %v2183_v52 = vpop.f32.mrf.mxu1  ;;  %v2985_v13 = vpop.f32.mrf.mxu0 }
 0x168   : > { %v1103_v54 = vadd.f32 %v2182_v49, %v942_v43 }
 0x169   : > { %v2184_v57 = vpop.f32.mrf.mxu1  ;;  %v2096_v9 = vpop.f32.mrf.mxu0 }
 0x16a   : > { %v1221_v60 = vmax.f32 %v1103_v54, 0.0  ;;  %v2185_v63 = vadd.f32 %v2184_v57, %v2183_v52  ;;  %v966_v52 = vadd.f32 %v2088_v38, %v2973_v17  ;;  %v2097_v53 = vadd.f32 %v2096_v9, %v2985_v13 }
 0x16b   : > { %v2186_v0 = vpop.f32.mrf.mxu1  ;;  %v2098_v21 = vpop.f32.mrf.mxu0 }
 0x16c   : > { %v1251_v5 = vpack.c.bf16 %v1221_v60, %v1220_v59  ;;  %v1108_v1 = vadd.f32 %v2185_v63, %v947_v62  ;;  %v2094_v62 = vadd.f32 %v2093_v3, %v2092_v58 }
 0x16d   : > { %v2187_v10 = vpop.f32.mrf.mxu1  ;;  %v2099_v29 = vpop.f32.mrf.mxu0 }
 0x16e   : > { %v2188_v4 = vadd.f32 %v2187_v10, %v2186_v0  ;;  %2308 = vmatmul.mubr.bf16.vlgmr.msra.gmra.mxu0 %v1251_v5  ;;  %v1222_v22 = vmax.f32 %v1108_v1, 0.0  ;;  %v971_v10 = vadd.f32 %v2091_v31, %v2973_v17 }
 0x16f   : > { %v2189_v6 = vpop.f32.mrf.mxu1  ;;  %v2989_v34 = vpop.f32.mrf.mxu0 }
 0x170   : > { %v1111_v16 = vadd.f32 %v2188_v4, %v950_v8 }
 0x171   : > { %v2190_v20 = vpop.f32.mrf.mxu1  ;;  %v2102_v36 = vpop.f32.mrf.mxu0 }
 0x172   : > { %v1223_v24 = vmax.f32 %v1111_v16, 0.0  ;;  %v2191_v27 = vadd.f32 %v2190_v20, %v2189_v6  ;;  %v974_v6 = vadd.f32 %v2094_v62, %v2973_v17  ;;  %v2103_v13 = vadd.f32 %v2102_v36, %v2989_v34 }
 0x173   : > { %v2192_v28 = vpop.f32.mrf.mxu1  ;;  %v2104_v40 = vpop.f32.mrf.mxu0 }
 0x174   : > { %v1252_v32 = vpack.c.bf16 %v1223_v24, %v1222_v22  ;;  %v1116_v11 = vadd.f32 %v2191_v27, %v955_v25  ;;  %v2100_v25 = vadd.f32 %v2099_v29, %v2098_v21 }
 0x175   : > { %v2193_v33 = vpop.f32.mrf.mxu1  ;;  %v2105_v50 = vpop.f32.mrf.mxu0 }
 0x176   : > { %v2194_v15 = vadd.f32 %v2193_v33, %v2192_v28  ;;  %2311 = vmatprep.mubr.bf16.mxu0 %v1252_v32  ;;  %v1224_v43 = vmax.f32 %v1116_v11, 0.0  ;;  %v979_v33 = vadd.f32 %v2097_v53, %v2973_v17  ;;  %v982_v19 = vadd.f32 %v2100_v25, %v2973_v17 }
 0x177   : > { %v2195_v23 = vpop.f32.mrf.mxu1  ;;  %v2107_v57 = vpop.f32.mrf.mxu0  ;;  %v2106_v29 = vadd.f32 %v2105_v50, %v2104_v40 }
 0x178   : > { %v1119_v37 = vadd.f32 %v2194_v15, %v958_v30 }
 0x179   : > { %v2196_v39 = vpop.f32.mrf.mxu1  ;;  %v2108_v41 = vpop.f32.mrf.mxu0 }
 0x17a   : > { %v1225_v44 = vmax.f32 %v1119_v37, 0.0  ;;  %v2197_v48 = vadd.f32 %v2196_v39, %v2195_v23  ;;  %v2109_v34 = vadd.f32 %v2108_v41, %v2107_v57 }
 0x17b   : > { %v2198_v49 = vpop.f32.mrf.mxu1  ;;  %v2110_v0 = vpop.f32.mrf.mxu0 }
 0x17c   : > { %v1253_v54 = vpack.c.bf16 %v1225_v44, %v1224_v43  ;;  %v1124_v59 = vadd.f32 %v2197_v48, %v963_v45 }
 0x17d   : > { %v2199_v55 = vpop.f32.mrf.mxu1  ;;  %v2111_v14 = vpop.f32.mrf.mxu0 }
 0x17e   : > { %v2200_v26 = vadd.f32 %v2199_v55, %v2198_v49  ;;  %2312 = vmatmul.mubr.bf16.gmra.mxu0 %v1253_v54  ;;  %v1226_v5 = vmax.f32 %v1124_v59, 0.0  ;;  %v990_v59 = vadd.f32 %v2106_v29, %v2973_v17  ;;  %v2112_v40 = vadd.f32 %v2111_v14, %v2110_v0 }
 0x17f   : > { %v2201_v35 = vpop.f32.mrf.mxu1  ;;  %v2113_v20 = vpop.f32.mrf.mxu0 }
 0x180   : > { %v1127_v60 = vadd.f32 %v2200_v26, %v966_v52  ;;  %v987_v52 = vadd.f32 %v2103_v13, %v2973_v17 }
 0x181   : > { %v2202_v63 = vpop.f32.mrf.mxu1  ;;  %v2114_v3 = vpop.f32.mrf.mxu0 }
 0x182   : > { %v1227_v8 = vmax.f32 %v1127_v60, 0.0  ;;  %v2203_v1 = vadd.f32 %v2202_v63, %v2201_v35  ;;  %v2115_v57 = vadd.f32 %v2114_v3, %v2113_v20 }
 0x183   : > { %v2204_v4 = vpop.f32.mrf.mxu1  ;;  %v2116_v28 = vpop.f32.mrf.mxu0 }
 0x184   : > { %v1254_v16 = vpack.c.bf16 %v1227_v8, %v1226_v5  ;;  %v1132_v22 = vadd.f32 %v2203_v1, %v971_v10  ;;  %v995_v1 = vadd.f32 %v2109_v34, %v2973_v17 }
 0x185   : > { %v2205_v18 = vpop.f32.mrf.mxu1  ;;  %v2117_v38 = vpop.f32.mrf.mxu0 }
 0x186   : > { %v2206_v47 = vadd.f32 %v2205_v18, %v2204_v4  ;;  %2315 = vmatprep.mubr.bf16.mxu0 %v1254_v16  ;;  %v1228_v30 = vmax.f32 %v1132_v22, 0.0  ;;  %v998_v16 = vadd.f32 %v2112_v40, %v2973_v17  ;;  %v2118_v0 = vadd.f32 %v2117_v38, %v2116_v28 }
 0x187   : > { %v2207_v58 = vpop.f32.mrf.mxu1  ;;  %v2119_v45 = vpop.f32.mrf.mxu0 }
 0x188   : > { %v1135_v24 = vadd.f32 %v2206_v47, %v974_v6 }
 0x189   : > { %v2208_v27 = vpop.f32.mrf.mxu1  ;;  %v2120_v35 = vpop.f32.mrf.mxu0 }
 0x18a   : > { %v1229_v32 = vmax.f32 %v1135_v24, 0.0  ;;  %v2209_v11 = vadd.f32 %v2208_v27, %v2207_v58  ;;  %v2121_v20 = vadd.f32 %v2120_v35, %v2119_v45 }
 0x18b   : > { %v2210_v15 = vpop.f32.mrf.mxu1  ;;  %v2122_v5 = vpop.f32.mrf.mxu0 }
 0x18c   : > { %v1255_v23 = vpack.c.bf16 %v1229_v32, %v1228_v30  ;;  %v1140_v39 = vadd.f32 %v2209_v11, %v979_v33  ;;  %v1003_v32 = vadd.f32 %v2115_v57, %v2973_v17 }
 0x18d   : > { %v2211_v37 = vpop.f32.mrf.mxu1  ;;  %v2123_v47 = vpop.f32.mrf.mxu0 }
 0x18e   : > { %v2212_v43 = vadd.f32 %v2211_v37, %v2210_v15  ;;  %2316 = vmatmul.mubr.bf16.gmra.mxu0 %v1255_v23  ;;  %v1230_v48 = vmax.f32 %v1140_v39, 0.0  ;;  %v1006_v15 = vadd.f32 %v2118_v0, %v2973_v17  ;;  %v2124_v28 = vadd.f32 %v2123_v47, %v2122_v5 }
 0x18f   : > { %v2213_v9 = vpop.f32.mrf.mxu1  ;;  %v2125_v25 = vpop.f32.mrf.mxu0 }
 0x190   : > { %v1143_v21 = vadd.f32 %v2212_v43, %v982_v19 }
 0x191   : > { %v2214_v44 = vpop.f32.mrf.mxu1  ;;  %v2126_v37 = vpop.f32.mrf.mxu0 }
 0x192   : > { %v1231_v49 = vmax.f32 %v1143_v21, 0.0  ;;  %v2215_v54 = vadd.f32 %v2214_v44, %v2213_v9  ;;  %v1011_v44 = vadd.f32 %v2121_v20, %v2973_v17  ;;  %v2127_v45 = vadd.f32 %v2126_v37, %v2125_v25 }
 0x193   : > { %v2216_v55 = vpop.f32.mrf.mxu1  ;;  %v2128_v9 = vpop.f32.mrf.mxu0  ;;  %v1035_v37 = vadd.f32 %v2958_v51, %v2973_v17 }
 0x194   : > { %v1256_v26 = vpack.c.bf16 %v1231_v49, %v1230_v48  ;;  %v1148_v60 = vadd.f32 %v2215_v54, %v987_v52  ;;  %v1014_v52 = vadd.f32 %v2124_v28, %v2973_v17  ;;  %v1019_v40 = vadd.f32 %v2127_v45, %v2973_v17 }
 0x195   : > { %v2217_v31 = vpop.f32.mrf.mxu1 }
 0x196   : > { %v2218_v62 = vadd.f32 %v2217_v31, %v2216_v55  ;;  %2319 = vmatprep.mubr.bf16.mxu0 %v1256_v26  ;;  %v1232_v8 = vmax.f32 %v1148_v60, 0.0 }
 0x197   : > { %v2219_v36 = vpop.f32.mrf.mxu1 }
 0x198   : > { %v1151_v63 = vadd.f32 %v2218_v62, %v990_v59  ;;  %v2129_v59 = vpop.f32.mrf.mxu0 }
 0x199   : > { %v2220_v50 = vpop.f32.mrf.mxu1  ;;  %v2130_v62 = vadd.f32 %v2129_v59, %v2128_v9 }
 0x19a   : > { %v1233_v10 = vmax.f32 %v1151_v63, 0.0  ;;  %v2221_v4 = vadd.f32 %v2220_v50, %v2219_v36 }
 0x19b   : > { %v2222_v6 = vpop.f32.mrf.mxu1 }
 0x19c   : > { %v1257_v18 = vpack.c.bf16 %v1233_v10, %v1232_v8  ;;  %v1156_v53 = vadd.f32 %v2221_v4, %v995_v1  ;;  %v1022_v8 = vadd.f32 %v2130_v62, %v2973_v17 }
 0x19d   : > { %v2223_v22 = vpop.f32.mrf.mxu1 }
 0x19e   : > { %v2224_v58 = vadd.f32 %v2223_v22, %v2222_v6  ;;  %2320 = vmatmul.mubr.bf16.gmra.mxu0 %v1257_v18  ;;  %v1234_v27 = vmax.f32 %v1156_v53, 0.0 }
 0x19f   : > { %v2225_v41 = vpop.f32.mrf.mxu1 }
 0x1a0   : > { %v1159_v24 = vadd.f32 %v2224_v58, %v998_v16 }
 0x1a1   : > { %v2226_v14 = vpop.f32.mrf.mxu1 }
 0x1a2   : > { %v1235_v30 = vmax.f32 %v1159_v24, 0.0  ;;  %v2227_v33 = vadd.f32 %v2226_v14, %v2225_v41  ;;  %v1027_v41 = vadd.f32 %v2954_v42, %v2973_v17  ;;  %v1030_v14 = vadd.f32 %v2956_v46, %v2973_v17 }
 0x1a3   : > { %v2228_v11 = vpop.f32.mrf.mxu1 }
 0x1a4   : > { %v1258_v19 = vpack.c.bf16 %v1235_v30, %v1234_v27  ;;  %v1164_v39 = vadd.f32 %v2227_v33, %v1003_v32 }
 0x1a5   : > { %v2229_v23 = vpop.f32.mrf.mxu1 }
 0x1a6   : > { %v2230_v43 = vadd.f32 %v2229_v23, %v2228_v11  ;;  %2323 = vmatprep.mubr.bf16.mxu0 %v1258_v19  ;;  %v1236_v21 = vmax.f32 %v1164_v39, 0.0 }
 0x1a7   : > { %v2231_v3 = vpop.f32.mrf.mxu1 }
 0x1a8   : > { %v1167_v13 = vadd.f32 %v2230_v43, %v1006_v15  ;;  %v1038_v43 = vadd.f32 %v2960_v56, %v2973_v17 }
 0x1a9   : > { %v2232_v38 = vpop.f32.mrf.mxu1 }
 0x1aa   : > { %v1237_v29 = vmax.f32 %v1167_v13, 0.0  ;;  %v2233_v48 = vadd.f32 %v2232_v38, %v2231_v3 }
 0x1ab   : > { %v2234_v49 = vpop.f32.mrf.mxu1 }
 0x1ac   : > { %v1259_v54 = vpack.c.bf16 %v1237_v29, %v1236_v21  ;;  %v1172_v26 = vadd.f32 %v2233_v48, %v1011_v44  ;;  %v1043_v44 = vadd.f32 %v2962_v61, %v2973_v17 }
 0x1ad   : > { %v2235_v55 = vpop.f32.mrf.mxu1 }
 0x1ae   : > { %v2236_v31 = vadd.f32 %v2235_v55, %v2234_v49  ;;  %2324 = vmatmul.mubr.bf16.gmra.mxu0 %v1259_v54  ;;  %v1238_v36 = vmax.f32 %v1172_v26, 0.0  ;;  %v1046_v49 = vadd.f32 %v2964_v2, %v2973_v17 }
 0x1af   : > { %v2237_v35 = vpop.f32.mrf.mxu1 }
 0x1b0   : > { %v1175_v60 = vadd.f32 %v2236_v31, %v1014_v52 }
 0x1b1   : > { %v2238_v34 = vpop.f32.mrf.mxu1 }
 0x1b2   : > { %v1239_v63 = vmax.f32 %v1175_v60, 0.0  ;;  %v2239_v50 = vadd.f32 %v2238_v34, %v2237_v35  ;;  %v1051_v60 = vadd.f32 %v2966_v7, %v2973_v17  ;;  %v1054_v34 = vadd.f32 %v2968_v12, %v2973_v17 }
 0x1b3   : > { %v2240_v5 = vpop.f32.mrf.mxu1 }
 0x1b4   : > { %v1260_v10 = vpack.c.bf16 %v1239_v63, %v1238_v36  ;;  %v1180_v4 = vadd.f32 %v2239_v50, %v1019_v40 }
 0x1b5   : > { %v2241_v1 = vpop.f32.mrf.mxu1 }
 0x1b6   : > { %v2242_v6 = vadd.f32 %v2241_v1, %v2240_v5  ;;  %2327 = vmatprep.mubr.bf16.mxu0 %v1260_v10  ;;  %v1240_v47 = vmax.f32 %v1180_v4, 0.0 }
 0x1b7   : > { %v2243_v16 = vpop.f32.mrf.mxu1 }
 0x1b8   : > { %v1183_v18 = vadd.f32 %v2242_v6, %v1022_v8 }
 0x1b9   : > { %v2244_v22 = vpop.f32.mrf.mxu1 }
 0x1ba   : > { %v1241_v53 = vmax.f32 %v1183_v18, 0.0  ;;  %v2245_v58 = vadd.f32 %v2244_v22, %v2243_v16 }
 0x1bb   : > { %v2246_v57 = vpop.f32.mrf.mxu1 }
 0x1bc   : > { %v1261_v24 = vpack.c.bf16 %v1241_v53, %v1240_v47  ;;  %v1188_v25 = vadd.f32 %v2245_v58, %v1027_v41 }
 0x1bd   : > { %v2247_v0 = vpop.f32.mrf.mxu1 }
 0x1be   : > { %v2248_v27 = vadd.f32 %v2247_v0, %v2246_v57  ;;  %2328 = vmatmul.mubr.bf16.gmra.mxu0 %v1261_v24  ;;  %v1242_v11 = vmax.f32 %v1188_v25, 0.0 }
 0x1bf   : > { %v2249_v30 = vpop.f32.mrf.mxu1 }
 0x1c0   : > { %v1191_v32 = vadd.f32 %v2248_v27, %v1030_v14 }
 0x1c1   : > { %v2250_v33 = vpop.f32.mrf.mxu1 }
 0x1c2   : > { %v1243_v15 = vmax.f32 %v1191_v32, 0.0  ;;  %v2251_v19 = vadd.f32 %v2250_v33, %v2249_v30 }
 0x1c3   : > { %v2252_v23 = vpop.f32.mrf.mxu1 }
 0x1c4   : > { %v1262_v39 = vpack.c.bf16 %v1243_v15, %v1242_v11  ;;  %v1196_v20 = vadd.f32 %v2251_v19, %v1035_v37 }
 0x1c5   : > { %v2253_v42 = vpop.f32.mrf.mxu1 }
 0x1c6   : > { %v2254_v46 = vadd.f32 %v2253_v42, %v2252_v23  ;;  %2331 = vmatprep.mubr.bf16.mxu0 %v1262_v39  ;;  %v1244_v38 = vmax.f32 %v1196_v20, 0.0 }
 0x1c7   : > { %v2255_v3 = vpop.f32.mrf.mxu1 }
 0x1c8   : > { %v1199_v13 = vadd.f32 %v2254_v46, %v1038_v43 }
 0x1c9   : > { %v2256_v28 = vpop.f32.mrf.mxu1 }
 0x1ca   : > { %v1245_v9 = vmax.f32 %v1199_v13, 0.0  ;;  %v2257_v21 = vadd.f32 %v2256_v28, %v2255_v3 }
 0x1cb   : > { %v2258_v29 = vpop.f32.mrf.mxu1 }
 0x1cc   : > { %v1263_v48 = vpack.c.bf16 %v1245_v9, %v1244_v38  ;;  %v1204_v52 = vadd.f32 %v2257_v21, %v1043_v44 }
 0x1cd   : > { %v2259_v51 = vpop.f32.mrf.mxu1 }
 0x1ce   : > { %v2260_v56 = vadd.f32 %v2259_v51, %v2258_v29  ;;  %2332 = vmatmul.mubr.bf16.gmra.mxu0 %v1263_v48  ;;  %v1246_v26 = vmax.f32 %v1204_v52, 0.0 }
 0x1cf   : > { %v2261_v54 = vpop.f32.mrf.mxu1 }
 0x1d0   : > { %v1207_v55 = vadd.f32 %v2260_v56, %v1046_v49 }
 0x1d1   : > { %v2262_v59 = vpop.f32.mrf.mxu1 }
 0x1d2   : > { %v1247_v31 = vmax.f32 %v1207_v55, 0.0  ;;  %v2263_v45 = vadd.f32 %v2262_v59, %v2261_v54 }
 0x1d3   : > { %v2264_v35 = vpop.f32.mrf.mxu1 }
 0x1d4   : > { %v1264_v61 = vpack.c.bf16 %v1247_v31, %v1246_v26  ;;  %v1212_v2 = vadd.f32 %v2263_v45, %v1051_v60 }
 0x1d5   : > { %v2265_v62 = vpop.f32.mrf.mxu1 }
 0x1d6   : > { %v2266_v36 = vadd.f32 %v2265_v62, %v2264_v35  ;;  %2335 = vmatprep.mubr.bf16.mxu0 %v1264_v61  ;;  %v1248_v40 = vmax.f32 %v1212_v2, 0.0 }
 0x1d8   : > { %v1215_v63 = vadd.f32 %v2266_v36, %v1054_v34 }
 0x1da   : > { %v1249_v50 = vmax.f32 %v1215_v63, 0.0 }
 0x1dc   : > { %v1265_v5 = vpack.c.bf16 %v1249_v50, %v1248_v40 }
 0x1de   : > { %2336 = vmatmul.mubr.bf16.gmra.mxu0 %v1265_v5 }
 0x22e   : > { %v2309_v8 = vpop.f32.mrf.mxu0 }
 0x230   : > { %v1364_v10 = vpop.f32.mrf.mxu0 }
 0x232   : > { %v2310_v1 = vpop.f32.mrf.mxu0 }
 0x233   : > { %v1956_v4 = vpack.c.bf16 %v2310_v1, %v2309_v8 }
 0x234   : > { %v1367_v6 = vpop.f32.mrf.mxu0 }
 0x235   : > { %2028 = vst [vmem:[%s3028_s5 + $0x8] sm:$0xff] %v1956_v4   ;;  %v1951_v7 = vpack.c.bf16 %v1367_v6, %v1364_v10 }
 0x237   : > { %1952 = vst [vmem:[%s3028_s5] sm:$0xff] %v1951_v7  }
 0x23e   : > { %v2313_v12 = vpop.f32.mrf.mxu0 }
 0x240   : > { %v1380_v17 = vpop.f32.mrf.mxu0 }
 0x242   : > { %v2314_v16 = vpop.f32.mrf.mxu0 }
 0x243   : > { %v1966_v18 = vpack.c.bf16 %v2314_v16, %v2313_v12 }
 0x244   : > { %v1383_v22 = vpop.f32.mrf.mxu0 }
 0x245   : > { %2030 = vst [vmem:[%s3028_s5 + $0x18] sm:$0xff] %v1966_v18   ;;  %v1961_v47 = vpack.c.bf16 %v1383_v22, %v1380_v17 }
 0x247   : > { %2029 = vst [vmem:[%s3028_s5 + $0x10] sm:$0xff] %v1961_v47  }
 0x24e   : > { %v2317_v53 = vpop.f32.mrf.mxu0 }
 0x250   : > { %v1396_v58 = vpop.f32.mrf.mxu0 }
 0x252   : > { %v2318_v57 = vpop.f32.mrf.mxu0 }
 0x253   : > { %v1976_v41 = vpack.c.bf16 %v2318_v57, %v2317_v53 }
 0x254   : > { %v1399_v24 = vpop.f32.mrf.mxu0 }
 0x255   : > { %2032 = vst [vmem:[%s3028_s5 + $0x28] sm:$0xff] %v1976_v41   ;;  %v1971_v0 = vpack.c.bf16 %v1399_v24, %v1396_v58 }
 0x257   : > { %2031 = vst [vmem:[%s3028_s5 + $0x20] sm:$0xff] %v1971_v0  }
 0x25e   : > { %v2321_v14 = vpop.f32.mrf.mxu0 }
 0x260   : > { %v1412_v25 = vpop.f32.mrf.mxu0 }
 0x262   : > { %v2322_v27 = vpop.f32.mrf.mxu0 }
 0x263   : > { %v1986_v30 = vpack.c.bf16 %v2322_v27, %v2321_v14 }
 0x264   : > { %v1415_v32 = vpop.f32.mrf.mxu0 }
 0x265   : > { %2034 = vst [vmem:[%s3028_s5 + $0x38] sm:$0xff] %v1986_v30   ;;  %v1981_v33 = vpack.c.bf16 %v1415_v32, %v1412_v25 }
 0x267   : > { %2033 = vst [vmem:[%s3028_s5 + $0x30] sm:$0xff] %v1981_v33  }
 0x26e   : > { %v2325_v11 = vpop.f32.mrf.mxu0 }
 0x270   : > { %v1428_v15 = vpop.f32.mrf.mxu0 }
 0x272   : > { %v2326_v19 = vpop.f32.mrf.mxu0 }
 0x273   : > { %v1996_v23 = vpack.c.bf16 %v2326_v19, %v2325_v11 }
 0x274   : > { %v1431_v37 = vpop.f32.mrf.mxu0 }
 0x275   : > { %2036 = vst [vmem:[%s3028_s5 + $0x48] sm:$0xff] %v1996_v23   ;;  %v1991_v39 = vpack.c.bf16 %v1431_v37, %v1428_v15 }
 0x277   : > { %2035 = vst [vmem:[%s3028_s5 + $0x40] sm:$0xff] %v1991_v39  }
 0x27e   : > { %v2329_v42 = vpop.f32.mrf.mxu0 }
 0x280   : > { %v1444_v43 = vpop.f32.mrf.mxu0 }
 0x282   : > { %v2330_v20 = vpop.f32.mrf.mxu0 }
 0x283   : > { %v2006_v46 = vpack.c.bf16 %v2330_v20, %v2329_v42 }
 0x284   : > { %v1447_v3 = vpop.f32.mrf.mxu0 }
 0x285   : > { %2038 = vst [vmem:[%s3028_s5 + $0x58] sm:$0xff] %v2006_v46   ;;  %v2001_v13 = vpack.c.bf16 %v1447_v3, %v1444_v43 }
 0x287   : > { %2037 = vst [vmem:[%s3028_s5 + $0x50] sm:$0xff] %v2001_v13  }
 0x28e   : > { %v2333_v28 = vpop.f32.mrf.mxu0 }
 0x290   : > { %v1460_v38 = vpop.f32.mrf.mxu0 }
 0x292   : > { %v2334_v9 = vpop.f32.mrf.mxu0 }
 0x293   : > { %v2016_v21 = vpack.c.bf16 %v2334_v9, %v2333_v28 }
 0x294   : > { %v1463_v29 = vpop.f32.mrf.mxu0 }
 0x295   : > { %2040 = vst [vmem:[%s3028_s5 + $0x68] sm:$0xff] %v2016_v21   ;;  %v2011_v44 = vpack.c.bf16 %v1463_v29, %v1460_v38 }
 0x297   : > { %2039 = vst [vmem:[%s3028_s5 + $0x60] sm:$0xff] %v2011_v44  }
 0x29e   : > { %v2337_v48 = vpop.f32.mrf.mxu0 }
 0x2a0   : > { %v1476_v51 = vpop.f32.mrf.mxu0 }
 0x2a2   : > { %v2338_v49 = vpop.f32.mrf.mxu0 }
 0x2a3   : > { %v2026_v52 = vpack.c.bf16 %v2338_v49, %v2337_v48 }
 0x2a4   : > { %v1479_v56 = vpop.f32.mrf.mxu0 }
 0x2a5   : > { %2042 = vst [vmem:[%s3028_s5 + $0x78] sm:$0xff] %v2026_v52   ;;  %v2021_v54 = vpack.c.bf16 %v1479_v56, %v1476_v51 }
 0x2a7   : > { %2041 = vst [vmem:[%s3028_s5 + $0x70] sm:$0xff] %v2021_v54  }
 0x2a8   : > { %2657 = shalt.err (!%p2654_p9)
}
 0x2a9   : > { %s2658_s10 = scalar_lea.hbm %s3049_s26, 2048  ;;  %s2662_s21 = scalar_lea.hbm %s3100_s4, 4096 }
 0x2aa   : > { %p2659_p13 = scmp.ne.s32.totalorder %s3049_s26, %s2658_s10  ;;  %p2663_p4 = scmp.lt.s32.totalorder %s3049_s26, %s3100_s4 }
 0x2ab   : > { %p2664_p8 = scmp.lt.s32.totalorder %s2662_s21, %s2658_s10 }
 0x2ac   : > { %p2660_p5 = pnand %p2659_p13, %p3116_p10 }
 0x2ad   : > { %p2665_p3 = por %p2664_p8, %p2663_p4 }
 0x2ae   : > { %p2661_p0 = pneg %p2660_p5 }
 0x2b0   : > { %p2666_p11 = pnand %p2665_p3, %p2661_p0 }
 0x2b2   : > { %2669 = shalt.err (!%p2666_p11)
}
 0x2b3   : > { %s2722_s5 = smov 64   ;;  %s2723_s6 = smov 4  }
 0x2b4   : > { %2365 = dma.vmem_to_hbm [thread:$0]  (%p3116_p10), %s3051_s7, 2048, %s3049_s26, %s1652_s27, %s2722_s5, %s2722_s5, %s2723_s6  }
 0x2b5 PF: > { %s1680_s25 = sand.u32 1, %s2700_s15   ;;  %p3117_p1 = scmp.ne.s32.totalorder %s3106_s22, 0 }
 0x2b6   : > { %p3118_p2 = scmp.ge.s32.totalorder %s2712_s18, 2  ;;  %s1681_s24 = scalar_lea.sflag [#allocation4], %s1680_s25 }
 0x2b8   : > { %p2379_p6 = pnand %p3118_p2, %p3117_p1 }
 0x2ba   : > { %p2380_p12 = pneg %p2379_p6 }
 0x2bc   : > { %2695 = dma.done.wait (%p2380_p12), %s1681_s24, 2048  }
 0x2bd   : > { %2697 = vsyncadd (%p2380_p12), %s1681_s24, 4294965248  ;;  %p18_p7 = scmp.ge.s32.totalorder %s2821_s11, 4   ;;  %s3119_s15 = smov %s2704_s16 }
 0x2be   : > { %s3120_s16 = smov %s2708_s17  ;;  %s3121_s17 = smov %s2837_s20 }
 0x2bf   : > { %s3122_s18 = smov %s2821_s11  ;;  %20 = sbr.rel (!%p18_p7) target bundleno = 6 (0x6), region = 89 }
 0x2c4   :  { %1686 = vsyncpa [#allocation3], 1 }
 0x2c5   :  { %1688 = vsyncpa [#allocation3 + $0x1], 1 }
 0x2c6   :  { %1689 = vsyncpa [#allocation6], 1 }
 0x2c7   :  { %1690 = vsyncpa [#allocation4], 1 }
 0x2c8   :  { %1692 = vsyncpa [#allocation4 + $0x1], 1 }

</bundles_post_ra>
